<compile_context>
chip_gen: v5e
topology: v5e:2x2
jax: 0.10.0
libtpu: 0.0.40
codegen_flags: <defaults>
</compile_context>

<pallas_src>
import math
import functools
import jax
import jax.numpy as jnp
from jax.experimental import pallas as pl
from jax.experimental.pallas import tpu as pltpu

LN_EPS = 1e-5  # PyTorch LayerNorm default eps


# ---------------------------------------------------------------------------
# Generation-aware knobs (queried lazily so module import stays cheap).
# ---------------------------------------------------------------------------
@functools.lru_cache(maxsize=None)
def _device_kind():
    try:
        return jax.devices()[0].device_kind.lower()
    except Exception:
        return ""


def _vmem_limit_bytes():
    kind = _device_kind()
    if ("v5" in kind) or ("v6" in kind):
        return 96 * 1024 * 1024     # 128 MiB physical VMEM
    return 48 * 1024 * 1024         # v7x (64 MiB physical) / unknown: stay safe


def _use_bf16_gates():
    # v5e (and older) has no bf16 VPU/EUP -> keep gate math in f32 there.
    kind = _device_kind()
    return not any(tag in kind for tag in ("v2", "v3", "v4", "v5"))


# ---------------------------------------------------------------------------
# Generic tiled linear kernel (node input projection, decoder fallback).
# ---------------------------------------------------------------------------
def _make_linear_kernel(K):
    small_k = K <= 8

    def kernel(x_ref, w_ref, o_ref):
        if small_k:
            # Tiny contraction dim: VPU broadcast multiply-adds instead of a
            # heavily underfilled MXU matmul (the op is HBM-bound anyway).
            x = x_ref[...].astype(jnp.float32)      # (TM, K)
            w = w_ref[...].astype(jnp.float32)      # (K, O)
            acc = x[:, 0:1] * w[0:1, :]
            for k in range(1, K):
                acc = acc + x[:, k:k + 1] * w[k:k + 1, :]
            o_ref[...] = acc.astype(o_ref.dtype)
        else:
            o_ref[...] = jnp.dot(
                x_ref[...].astype(jnp.bfloat16),
                w_ref[...].astype(jnp.bfloat16),
                preferred_element_type=jnp.float32).astype(o_ref.dtype)

    return kernel


def pallas_linear(x2d, w, out_dtype=jnp.float32, tile_m=512):
    M, K = x2d.shape
    O = w.shape[1]
    tm = M if M <= tile_m else tile_m           # full (==M) or multiple of 8
    return pl.pallas_call(
        _make_linear_kernel(K),
        out_shape=jax.ShapeDtypeStruct((M, O), out_dtype),
        grid=(pl.cdiv(M, tm),),
        in_specs=[pl.BlockSpec((tm, K), lambda m: (m, 0)),
                  pl.BlockSpec((K, O), lambda m: (0, 0))],
        out_specs=pl.BlockSpec((tm, O), lambda m: (m, 0)),
        compiler_params=pltpu.CompilerParams(
            dimension_semantics=("parallel",),
            vmem_limit_bytes=_vmem_limit_bytes()),
    )(x2d, w)


# ---------------------------------------------------------------------------
# Fused multi-output linear: one read of x, several (K, O) weights, several
# outputs.  Used for the per-layer V/A/B (or A/B) projections of h so no
# XLA-level slicing of a concatenated projection array is ever needed.
# ---------------------------------------------------------------------------
def _make_multi_linear_kernel(n_w):
    def kernel(*refs):
        x_ref = refs[0]
        w_refs = refs[1:1 + n_w]
        o_refs = refs[1 + n_w:]
        x = x_ref[...].astype(jnp.bfloat16)
        for w_ref, o_ref in zip(w_refs, o_refs):
            o_ref[...] = jnp.dot(
                x, w_ref[...].astype(jnp.bfloat16),
                preferred_element_type=jnp.float32).astype(o_ref.dtype)

    return kernel


def pallas_multi_linear(x2d, ws, out_dtype=jnp.bfloat16, tile_m=512):
    M, K = x2d.shape
    tm = M if M <= tile_m else tile_m
    n_w = len(ws)
    in_specs = [pl.BlockSpec((tm, K), lambda m: (m, 0))]
    in_specs += [pl.BlockSpec(w.shape, lambda m: (0, 0)) for w in ws]
    out_shape = tuple(jax.ShapeDtypeStruct((M, w.shape[1]), out_dtype)
                      for w in ws)
    out_specs = tuple(pl.BlockSpec((tm, w.shape[1]), lambda m: (m, 0))
                      for w in ws)
    return pl.pallas_call(
        _make_multi_linear_kernel(n_w),
        out_shape=out_shape,
        grid=(pl.cdiv(M, tm),),
        in_specs=in_specs,
        out_specs=out_specs,
        compiler_params=pltpu.CompilerParams(
            dimension_semantics=("parallel",),
            vmem_limit_bytes=_vmem_limit_bytes()),
    )(x2d, *ws)


# ---------------------------------------------------------------------------
# Encoder layer kernel factory.
# Flattened grid of length BP * ceil(N / tile_i); each step handles batch b
# and tile_i edge rows.  Input order (must match encoder_layer below):
#   e_or_ef, [W_edge], Ah, Bh, Wc, g_e, b_e, [W_dec^T] | [h, Vh, g_h, b_h]
# Outputs: [out] (fused decoder) | [h_out, e_out].
# ---------------------------------------------------------------------------
def _make_layer_kernel(*, N, H, tile_i, edge_in, fused_input, fused_decoder,
                       bf16_gates):
    def kernel(*refs):
        it = iter(refs)
        e_ref = next(it)
        we_ref = next(it) if fused_input else None
        ah_ref = next(it)
        bh_ref = next(it)
        wc_ref = next(it)
        ge_ref = next(it)
        be_ref = next(it)
        if fused_decoder:
            wd_ref = next(it)
            out_ref = next(it)
        else:
            h_ref = next(it)
            vh_ref = next(it)
            gh_ref = next(it)
            bhb_ref = next(it)
            h_out_ref = next(it)
            e_out_ref = next(it)

        # --- build the e_in tile and the bf16 operand for the Ce matmul ----
        if fused_input:
            # Fused edge input projection: small-K VPU MACs; e0 never hits HBM.
            ef = e_ref[0].astype(jnp.float32)            # (tile_i, N, edge_in)
            we = we_ref[...].astype(jnp.float32)         # (edge_in, H)
            e_in = ef[:, :, 0:1] * we[0:1, :][None, :, :]
            for k in range(1, edge_in):
                e_in = e_in + ef[:, :, k:k + 1] * we[k:k + 1, :][None, :, :]
            e_mm = e_in.astype(jnp.bfloat16)
        else:
            e_blk = e_ref[0]                             # bf16 (tile_i, N, H)
            e_mm = e_blk                                 # feed MXU directly
            e_in = e_blk.astype(jnp.float32)             # residual only

        # --- Ce = e @ Wc : one big MXU matmul per tile (bf16 operands,
        #     f32 accumulation); Wc already bf16 -------------------------
        Ce = jnp.dot(e_mm.reshape(tile_i * N, H), wc_ref[...],
                     preferred_element_type=jnp.float32).reshape(tile_i, N, H)

        Ah = ah_ref[0].astype(jnp.float32)               # (N, H)      j-indexed
        Bh = bh_ref[0].astype(jnp.float32)               # (tile_i, H) i-indexed
        e_new = Ah[None, :, :] + Bh[:, None, :] + Ce     # (tile_i, N, H)

        # --- edge stream: one-pass LayerNorm(H) -> ReLU -> residual --------
        mu_e = jnp.mean(e_new, axis=-1, keepdims=True)
        ms_e = jnp.mean(e_new * e_new, axis=-1, keepdims=True)
        var_e = jnp.maximum(ms_e - mu_e * mu_e, 0.0)
        e_ln = ((e_new - mu_e) * jax.lax.rsqrt(var_e + LN_EPS)
                * ge_ref[...][None, :, :] + be_ref[...][None, :, :])
        e_res = e_in + jnp.maximum(e_ln, 0.0)

        if fused_decoder:
            # Linear decoder fused as a lane reduction -> lane-dense
            # (tile_i, N) output.  Last-layer h update is dead code.
            wd = wd_ref[...].astype(jnp.float32)         # (1, H)
            out_ref[0] = jnp.sum(e_res * wd[None, :, :], axis=-1)
        else:
            e_out_ref[0] = e_res.astype(e_out_ref.dtype)

            # --- node stream ----------------------------------------------
            if bf16_gates:
                gates = jax.nn.sigmoid(e_new.astype(jnp.bfloat16))
                prod = gates * vh_ref[0][None, :, :]          # bf16 products
                h_agg = jnp.sum(prod, axis=1, dtype=jnp.float32)
            else:
                gates = jax.nn.sigmoid(e_new)
                vh = vh_ref[0].astype(jnp.float32)
                h_agg = jnp.sum(gates * vh[None, :, :], axis=1)
            h_i = h_ref[0].astype(jnp.float32)
            h_pre = h_i + h_agg
            mu_h = jnp.mean(h_pre, axis=-1, keepdims=True)
            ms_h = jnp.mean(h_pre * h_pre, axis=-1, keepdims=True)
            var_h = jnp.maximum(ms_h - mu_h * mu_h, 0.0)
            h_ln = ((h_pre - mu_h) * jax.lax.rsqrt(var_h + LN_EPS)
                    * gh_ref[...] + bhb_ref[...])
            h_out_ref[0] = (h_i + jnp.maximum(h_ln, 0.0)).astype(h_out_ref.dtype)

    return kernel


def _pick_tile_i(N, H):
    """Rows of i per grid step: ~2 MiB per f32 (tile_i, N, H) temp."""
    target = 2 * 1024 * 1024
    cand = max(1, target // (N * H * 4))
    if cand >= N:
        return N
    t = (cand // 8) * 8
    if t < 8:
        return min(8, N)
    while t > 8 and N % t != 0:   # prefer exact divisor to avoid partial tiles
        t -= 8
    return t


def encoder_layer(h, e_or_ef, lp, *, w_edge=None, w_dec=None, tile_i,
                  fused_input, fused_decoder):
    BP, N, H = h.shape
    vmem_limit = _vmem_limit_bytes()
    bf16_gates = _use_bf16_gates()

    # Hoisted, i-invariant projections of h: one fused multi-output matmul
    # pass (h read once; outputs stored bf16; no XLA slicing).
    if fused_decoder:
        ws = [lp["Wa"].astype(jnp.bfloat16), lp["Wb"].astype(jnp.bfloat16)]
        Ah2d, Bh2d = pallas_multi_linear(h.reshape(BP * N, H), ws)
        Vh = None
    else:
        ws = [lp["Wv"].astype(jnp.bfloat16), lp["Wa"].astype(jnp.bfloat16),
              lp["Wb"].astype(jnp.bfloat16)]
        Vh2d, Ah2d, Bh2d = pallas_multi_linear(h.reshape(BP * N, H), ws)
        Vh = Vh2d.reshape(BP, N, H)
    Ah = Ah2d.reshape(BP, N, H)
    Bh = Bh2d.reshape(BP, N, H)

    n_it = pl.cdiv(N, tile_i)
    grid = (BP * n_it,)                     # single parallel axis: balanced
    edge_in = e_or_ef.shape[-1] if fused_input else None

    kernel = _make_layer_kernel(N=N, H=H, tile_i=tile_i, edge_in=edge_in,
                                fused_input=fused_input,
                                fused_decoder=fused_decoder,
                                bf16_gates=bf16_gates)

    row_full = pl.BlockSpec((1, N, H), lambda g: (g // n_it, 0, 0))
    row_tile = pl.BlockSpec((1, tile_i, H), lambda g: (g // n_it, g % n_it, 0))
    vec_spec = pl.BlockSpec((1, H), lambda g: (0, 0))
    wc_spec = pl.BlockSpec((H, H), lambda g: (0, 0))
    e_spec = pl.BlockSpec((1, tile_i, N, e_or_ef.shape[-1]),
                          lambda g: (g // n_it, g % n_it, 0, 0))

    in_specs = [e_spec]
    inputs = [e_or_ef]
    if fused_input:
        in_specs.append(pl.BlockSpec((edge_in, H), lambda g: (0, 0)))
        inputs.append(w_edge)
    in_specs += [row_full, row_tile, wc_spec, vec_spec, vec_spec]
    inputs += [Ah, Bh, lp["Wc"].astype(jnp.bfloat16), lp["g_e"], lp["b_e"]]

    if fused_decoder:
        in_specs.append(vec_spec)                       # W_dec^T, shape (1, H)
        inputs.append(w_dec.T)
        out_shape = jax.ShapeDtypeStruct((BP, N, N), jnp.float32)
        out_specs = pl.BlockSpec((1, tile_i, N),
                                 lambda g: (g // n_it, g % n_it, 0))
    else:
        in_specs += [row_tile, row_full, vec_spec, vec_spec]
        inputs += [h, Vh, lp["g_h"], lp["b_h"]]
        out_shape = (jax.ShapeDtypeStruct((BP, N, H), jnp.float32),
                     jax.ShapeDtypeStruct((BP, N, N, H), jnp.bfloat16))
        out_specs = (row_tile,
                     pl.BlockSpec((1, tile_i, N, H),
                                  lambda g: (g // n_it, g % n_it, 0, 0)))

    res = pl.pallas_call(
        kernel,
        out_shape=out_shape,
        grid=grid,
        in_specs=in_specs,
        out_specs=out_specs,
        compiler_params=pltpu.CompilerParams(
            dimension_semantics=("parallel",),
            vmem_limit_bytes=vmem_limit),
    )(*inputs)

    if fused_decoder:
        return h, None, res          # (h unused downstream), no e, decoder out
    h_new, e_new = res
    return h_new, e_new, None


# ---------------------------------------------------------------------------
# Parameter initialization (deterministic, PyTorch-Linear-style uniform;
# module default bias=False -> no biases anywhere).
# ---------------------------------------------------------------------------
def init_params(key, node_in, edge_in, hidden, n_layers, edge_out):
    def lin(k, fan_in, fan_out):
        bound = 1.0 / math.sqrt(fan_in)
        return jax.random.uniform(k, (fan_in, fan_out), jnp.float32, -bound, bound)

    keys = jax.random.split(key, 3 + n_layers)
    params = {
        "W_node": lin(keys[0], node_in, hidden),
        "W_edge": lin(keys[1], edge_in, hidden),
        "W_dec": lin(keys[2], hidden, edge_out),
        "layers": [],
    }
    for l in range(n_layers):
        lk = jax.random.split(keys[3 + l], 8)
        # Reference layer also builds U projection and an MLP in __init__ but
        # never uses them in forward(); omitted here.
        params["layers"].append({
            "Wv": lin(lk[0], hidden, hidden),
            "Wa": lin(lk[1], hidden, hidden),
            "Wb": lin(lk[2], hidden, hidden),
            "Wc": lin(lk[3], hidden, hidden),
            "g_h": 1.0 + 0.1 * jax.random.normal(lk[4], (1, hidden), jnp.float32),
            "b_h": 0.1 * jax.random.normal(lk[5], (1, hidden), jnp.float32),
            "g_e": 1.0 + 0.1 * jax.random.normal(lk[6], (1, hidden), jnp.float32),
            "b_e": 0.1 * jax.random.normal(lk[7], (1, hidden), jnp.float32),
        })
    return params


# ---------------------------------------------------------------------------
# Full EdgeGNNModel forward.
# ---------------------------------------------------------------------------
def edge_gnn_forward(params, node_features, edge_features, logit_clipping=0.0):
    # node_features: (B, POMO, N, node_in); edge_features: (B, POMO, N, N, edge_in)
    B, P, N, node_in = node_features.shape
    edge_in = edge_features.shape[-1]
    BP = B * P
    H = params["W_node"].shape[1]
    edge_out = params["W_dec"].shape[1]
    n_layers = len(params["layers"])
    assert n_layers >= 1

    h = pallas_linear(node_features.reshape(BP * N, node_in),
                      params["W_node"]).reshape(BP, N, H)
    ef = edge_features.reshape(BP, N, N, edge_in)

    tile_i = _pick_tile_i(N, H)
    e = None
    out = None
    for li, lp in enumerate(params["layers"]):
        first = (li == 0)
        last = (li == n_layers - 1)
        fuse_dec = last and (edge_out == 1)
        h, e, out = encoder_layer(
            h, ef if first else e, lp,
            w_edge=params["W_edge"] if first else None,
            w_dec=params["W_dec"] if fuse_dec else None,
            tile_i=tile_i, fused_input=first, fused_decoder=fuse_dec)

    if out is None:
        # Generic fallback (edge_out != 1): tiled decoder matmul.
        out = pallas_linear(e.reshape(BP * N * N, H),
                            params["W_dec"]).reshape(BP, N * N, edge_out)
    else:
        out = out.reshape(BP, N * N, 1)

    # TODO(synk): DECODER_DICT class bodies were not provided; 'linear' decoder
    # is assumed to be Linear(hidden_dim, edge_out_dim) with aux_node = None.
    aux_node = None
    if logit_clipping > 0.0:
        out = logit_clipping * jnp.tanh(out / math.sqrt(H))
    return out, aux_node


# ---------------------------------------------------------------------------
# Pure-JAX f32 reference (mirrors the PyTorch math) for correctness checking.
# ---------------------------------------------------------------------------
def reference_forward(params, node_features, edge_features, logit_clipping=0.0):
    B, P, N, node_in = node_features.shape
    BP = B * P
    H = params["W_node"].shape[1]
    h = node_features.reshape(BP, N, node_in) @ params["W_node"]
    e = edge_features.reshape(BP, N, N, -1) @ params["W_edge"]

    def ln(x, g, b):
        mu = jnp.mean(x, -1, keepdims=True)
        var = jnp.mean((x - mu) ** 2, -1, keepdims=True)
        return (x - mu) * jax.lax.rsqrt(var + LN_EPS) * g + b

    for lp in params["layers"]:
        h_in, e_in = h, e
        Vh = h @ lp["Wv"]
        Ah = h @ lp["Wa"]
        Bh = h @ lp["Wb"]
        Ce = e @ lp["Wc"]
        e_new = Ah[:, None, :, :] + Bh[:, :, None, :] + Ce
        gates = jax.nn.sigmoid(e_new)
        h_pre = h + jnp.sum(gates * Vh[:, None, :, :], axis=2)
        h = h_in + jax.nn.relu(ln(h_pre, lp["g_h"][0], lp["b_h"][0]))
        e = e_in + jax.nn.relu(ln(e_new, lp["g_e"][0], lp["b_e"][0]))
    out = e.reshape(BP, N * N, H) @ params["W_dec"]
    if logit_clipping > 0.0:
        out = logit_clipping * jnp.tanh(out / math.sqrt(H))
    return out


if __name__ == "__main__":
    def run_case(B, P, N, node_in, edge_in, hidden, n_layers, edge_out, tol):
        key = jax.random.PRNGKey(0)
        kp, kn, ke = jax.random.split(key, 3)
        params = init_params(kp, node_in, edge_in, hidden, n_layers, edge_out)
        node_features = jax.random.normal(kn, (B, P, N, node_in), jnp.float32)
        edge_features = jax.random.normal(ke, (B, P, N, N, edge_in), jnp.float32)

        out, aux_node = edge_gnn_forward(params, node_features, edge_features)
        out = jax.block_until_ready(out)
        assert out.shape == (B * P, N * N, edge_out), out.shape
        assert aux_node is None

        ref = reference_forward(params, node_features, edge_features)
        # bf16 inter-layer e storage, bf16 MXU operands and (on v6e/v7x) bf16
        # gate math vs. the f32 reference.
        max_err = float(jnp.max(jnp.abs(out - ref)))
        assert jnp.allclose(out, ref, atol=tol, rtol=tol), max_err

    # Small smoke test (blocks equal the full array dims).
    run_case(B=2, P=1, N=8, node_in=4, edge_in=2, hidden=32,
             n_layers=2, edge_out=1, tol=1e-1)
    # Production-like lane-width test: H=128, N=128 exercises the real
    # (tile_i < N) tiling and lane-dense output path.
    run_case(B=1, P=1, N=128, node_in=4, edge_in=2, hidden=128,
             n_layers=2, edge_out=1, tol=1.5e-1)
    print("KERNEL_OK")
</pallas_src>

<mosaic_0001>
module attributes {stable_mosaic.version = 11 : i64} {
  func.func @kernel(%arg0: i32, %arg1: memref<16x4xf32, #tpu.memory_space<vmem>>, %arg2: memref<4x32xf32, #tpu.memory_space<vmem>>, %arg3: memref<16x32xf32, #tpu.memory_space<vmem>>) attributes {dimension_semantics = [#tpu.dimension_semantics<parallel>], iteration_bounds = array<i64: 1>, scalar_prefetch = 0 : i64, scratch_operands = 0 : i64, tpu.core_type = #tpu.core_type<tc>, window_params = [{transform_indices = @transform_0, window_bounds = array<i64: 16, 4>}, {pipeline_mode = #tpu.pipeline_mode<synchronous>, transform_indices = @transform_1, window_bounds = array<i64: 4, 32>}, {transform_indices = @transform_2, window_bounds = array<i64: 16, 32>}]} {
    %c0 = arith.constant 0 : index
    %c0_0 = arith.constant 0 : index
    %0 = vector.load %arg1[%c0, %c0_0] : memref<16x4xf32, #tpu.memory_space<vmem>>, vector<16x4xf32>
    %c0_1 = arith.constant 0 : index
    %c0_2 = arith.constant 0 : index
    %1 = vector.load %arg2[%c0_1, %c0_2] : memref<4x32xf32, #tpu.memory_space<vmem>>, vector<4x32xf32>
    %2 = vector.extract_strided_slice %0 {offsets = [0, 0], sizes = [16, 1], strides = [1, 1]} : vector<16x4xf32> to vector<16x1xf32>
    %3 = vector.extract_strided_slice %1 {offsets = [0, 0], sizes = [1, 32], strides = [1, 1]} : vector<4x32xf32> to vector<1x32xf32>
    %4 = vector.broadcast %2 : vector<16x1xf32> to vector<16x32xf32>
    %5 = vector.broadcast %3 : vector<1x32xf32> to vector<16x32xf32>
    %6 = arith.mulf %4, %5 : vector<16x32xf32>
    %7 = vector.extract_strided_slice %0 {offsets = [0, 1], sizes = [16, 1], strides = [1, 1]} : vector<16x4xf32> to vector<16x1xf32>
    %8 = vector.extract_strided_slice %1 {offsets = [1, 0], sizes = [1, 32], strides = [1, 1]} : vector<4x32xf32> to vector<1x32xf32>
    %9 = vector.broadcast %7 : vector<16x1xf32> to vector<16x32xf32>
    %10 = vector.broadcast %8 : vector<1x32xf32> to vector<16x32xf32>
    %11 = arith.mulf %9, %10 : vector<16x32xf32>
    %12 = arith.addf %6, %11 : vector<16x32xf32>
    %13 = vector.extract_strided_slice %0 {offsets = [0, 2], sizes = [16, 1], strides = [1, 1]} : vector<16x4xf32> to vector<16x1xf32>
    %14 = vector.extract_strided_slice %1 {offsets = [2, 0], sizes = [1, 32], strides = [1, 1]} : vector<4x32xf32> to vector<1x32xf32>
    %15 = vector.broadcast %13 : vector<16x1xf32> to vector<16x32xf32>
    %16 = vector.broadcast %14 : vector<1x32xf32> to vector<16x32xf32>
    %17 = arith.mulf %15, %16 : vector<16x32xf32>
    %18 = arith.addf %12, %17 : vector<16x32xf32>
    %19 = vector.extract_strided_slice %0 {offsets = [0, 3], sizes = [16, 1], strides = [1, 1]} : vector<16x4xf32> to vector<16x1xf32>
    %20 = vector.extract_strided_slice %1 {offsets = [3, 0], sizes = [1, 32], strides = [1, 1]} : vector<4x32xf32> to vector<1x32xf32>
    %21 = vector.broadcast %19 : vector<16x1xf32> to vector<16x32xf32>
    %22 = vector.broadcast %20 : vector<1x32xf32> to vector<16x32xf32>
    %23 = arith.mulf %21, %22 : vector<16x32xf32>
    %24 = arith.addf %18, %23 : vector<16x32xf32>
    %c0_3 = arith.constant 0 : index
    %c0_4 = arith.constant 0 : index
    %25 = vector.load %arg3[%c0_3, %c0_4] : memref<16x32xf32, #tpu.memory_space<vmem>>, vector<16x32xf32>
    tpu.vector_store %arg3[%c0_3, %c0_4], %24 {strides = array<i32>} : memref<16x32xf32, #tpu.memory_space<vmem>>, vector<16x32xf32>,
    return
  }
  func.func @transform_0(%arg0: i32) -> (i32, i32) {
    %c0_i32 = arith.constant 0 : i32
    %c0_i32_0 = arith.constant 0 : i32
    return %arg0, %c0_i32 : i32, i32
  }
  func.func @transform_1(%arg0: i32) -> (i32, i32) {
    %c0_i32 = arith.constant 0 : i32
    %c0_i32_0 = arith.constant 0 : i32
    %c0_i32_1 = arith.constant 0 : i32
    return %c0_i32, %c0_i32_0 : i32, i32
  }
  func.func @transform_2(%arg0: i32) -> (i32, i32) {
    %c0_i32 = arith.constant 0 : i32
    %c0_i32_0 = arith.constant 0 : i32
    return %arg0, %c0_i32 : i32, i32
  }
}

</mosaic_0001>

<bundles_post_ra>
// kernel: tpu_custom_call.1
= control target key start
LH: loop header
LB: loop body
LE: loop exit
PB: predicated region body
PF: predicated region fallthrough
CT: control target
= control target key end

     0   :  { %v126_v1 = vmov 1   ;;  %v127_v2 = vmov 0   ;;  %s160_s0 = inlined_call_operand.vmem [shape: f32[16,4], index: 0, kind: input, shape index: {}]   ;;  %s161_s1 = inlined_call_operand.vmem [shape: f32[4,32], index: 1, kind: input, shape index: {}]   ;;  %s162_s2 = inlined_call_operand.hbm [shape: f32[16,32], index: 2, kind: output, shape index: {}]  }
   0x1   :  { %v12_v0 = vld [vmem:[%s160_s0] sm:$0xff]  ;;  %96 = vset.pattern.permute.xlu1 %v126_v1  ;;  %95 = vset.pattern.permute.xlu0 %v127_v2 }
   0x2   :  { %7 = vsyncpa [#allocation3], 0  ;;  %29 = vperm.xlu1 %96, %v12_v0   ;;  %17 = vperm.xlu0 %95, %v12_v0   ;;  %v128_v3 = vmov 2   ;;  %v13_v4 = vld [vmem:[%s160_s0 + $0x8] sm:$0xff]  ;;  %v129_v5 = vmov 3   ;;  %s130_s0 = smov [#allocation2]  }
   0x3   :  { %97 = vset.pattern.permute.xlu2 %v128_v3  ;;  %v14_v8 = vld [vmem:[%s161_s1] sm:$0xf]  ;;  %s74_s1 = sshll.u32 %s130_s0, 4  ;;  %s76_s17 = sshll.u32 %s162_s2, 4  ;;  %vm67_vm0 = vcmask 261120   ;;  %s75_s1 = int_to_ptr.vmem [resolvable:$true] %s74_s1  ;;  %s77_s17 = int_to_ptr.hbm [resolvable:$true] %s76_s17 }
   0x4   :  { %42 = vperm.xlu2 %97, %v12_v0   ;;  %v36_v10 = vperm.slane %v14_v8, 1  ;;  %v25_v11 = vperm.slane %v14_v8, 0  ;;  %v49_v14 = vperm.slane %v14_v8, 2  ;;  %v62_v23 = vperm.slane %v14_v8, 3  ;;  %s131_s18 = smov 128   ;;  %s132_s19 = smov 8  }
   0xa   :  { %33 = vperm.xlu1 %96, %v13_v4   ;;  %22 = vperm.xlu0 %95, %v13_v4  }
   0xc   :  { %46 = vperm.xlu2 %97, %v13_v4  }
  0x12   :  { %99 = vset.pattern.permute.xlu1 %v129_v5  ;;  %98 = vset.pattern.permute.xlu0 %v129_v5 }
  0x13   :  { %59 = vperm.xlu1 %99, %v13_v4   ;;  %55 = vperm.xlu0 %98, %v12_v0  }
  0x5e   :  { %v43_v9 = vpop.permute.xlu2 %42 }
  0x5f   :  { %v50_v20 = vmul.f32 %v49_v14, %v43_v9 }
  0x66   :  { %v47_v19 = vpop.permute.xlu2 %46 }
  0x67   :  { %v51_v24 = vmul.f32 %v49_v14, %v47_v19 }
  0x74   :  { %v30_v6 = vpop.permute.xlu1 %29  ;;  %v18_v7 = vpop.permute.xlu0 %17 }
  0x75   :  { %v37_v15 = vmul.f32 %v36_v10, %v30_v6  ;;  %v26_v16 = vmul.f32 %v25_v11, %v18_v7 }
  0x77   :  { %v39_v21 = vadd.f32 %v37_v15, %v26_v16 }
  0x79   :  { %v52_v29 = vadd.f32 %v50_v20, %v39_v21 }
  0x7c   :  { %v34_v12 = vpop.permute.xlu1 %33  ;;  %v23_v13 = vpop.permute.xlu0 %22 }
  0x7d   :  { %v38_v17 = vmul.f32 %v36_v10, %v34_v12  ;;  %v27_v18 = vmul.f32 %v25_v11, %v23_v13 }
  0x7f   :  { %v40_v22 = vadd.f32 %v38_v17, %v27_v18 }
  0x81   :  { %v53_v27 = vadd.f32 %v51_v24, %v40_v22 }
  0x85   :  { %v60_v25 = vpop.permute.xlu1 %59  ;;  %v56_v26 = vpop.permute.xlu0 %55 }
  0x86   :  { %v64_v28 = vmul.f32 %v62_v23, %v60_v25  ;;  %v63_v30 = vmul.f32 %v62_v23, %v56_v26 }
  0x88   :  { %v66_v31 = vadd.f32 %v64_v28, %v53_v27  ;;  %v65_v32 = vadd.f32 %v63_v30, %v52_v29 }
  0x8a   :  { %69 = vst.msk [vmem:[#allocation2 + $0x8] sm:$0xff] %vm67_vm0, %v66_v31 }
  0x8b   :  { %68 = vst.msk [vmem:[#allocation2] sm:$0xff] %vm67_vm0, %v65_v32 }
  0x8c   :  { %82 = dma.vmem_to_hbm [thread:$0]  %s75_s1, 256, %s77_s17, [#allocation3], %s131_s18, %s131_s18, %s132_s19  }
  0x8d   :  { %124 = dma.done.wait [#allocation3], 256  }
  0x8e   :  { %125 = vsyncadd [#allocation3], 4294967040 }
  0x8f   :  { %87 = vsyncpa [#allocation3], 1 }

</bundles_post_ra>
